<compile_context>
chip_gen: v5e
topology: v5e:2x2
jax: 0.10.0
libtpu: 0.0.40
codegen_flags: <defaults>
</compile_context>

<pallas_src>
import jax
import jax.numpy as jnp
from jax.experimental import pallas as pl
from jax.experimental.pallas import tpu as pltpu


# ---------------------------------------------------------------------------
# Kernel
# ---------------------------------------------------------------------------
def _mlp_kernel(x_ref, w1_ref, b1_ref, w2_ref, b2_ref, o_ref):
    # Linear 1: bf16 operands, f32 accumulation on the MXU; bias add in f32.
    h = jnp.dot(x_ref[...], w1_ref[...],
                preferred_element_type=jnp.float32) + b1_ref[...]

    # Sigmoid via a single EUP transcendental: sigmoid(x) = 0.5 * tanh(0.5 * x) + 0.5.
    h = 0.5 * jnp.tanh(0.5 * h) + 0.5

    # Linear 2: cast activations to bf16 for the MXU; keep post-matmul math in f32.
    z = jnp.dot(h.astype(w2_ref.dtype), w2_ref[...],
                preferred_element_type=jnp.float32) + b2_ref[...]

    # Numerically stable softmax over dim=1 on the true (unpadded) n_output columns.
    z = z - jnp.max(z, axis=1, keepdims=True)
    e = jnp.exp(z)
    # Exact reciprocal: only TB values per tile, restores row sums to ~1e-6 of 1.0.
    inv_sum = pl.reciprocal(jnp.sum(e, axis=1, keepdims=True), approx=False)
    o_ref[...] = (e * inv_sum).astype(o_ref.dtype)


# ---------------------------------------------------------------------------
# Wrapper helpers
# ---------------------------------------------------------------------------
def _round_up(x, m):
    return ((x + m - 1) // m) * m


def _vmem_limit_bytes():
    """Generation-aware VMEM limit: about half of physical capacity."""
    try:
        cap = int(pltpu.get_tpu_info().vmem_capacity_bytes)
    except Exception:
        cap = 64 * 1024 * 1024  # conservative (v7x-sized) fallback
    return int(min(max(cap // 2, 16 * 1024 * 1024), 96 * 1024 * 1024))


def _pick_batch_tile(B, n_input, n_hidden, n_output, vmem_limit, max_batch_tile):
    """Largest batch tile fitting the VMEM budget, with >=2 grid steps when B allows."""
    # Resident weights/biases (bf16 weights, f32 biases).
    resident = 2 * (n_input * n_hidden + n_hidden * n_output) + 4 * (n_hidden + n_output)
    # Per-row bytes: double-buffered bf16 x tile + double-buffered f32 out tile
    # + ~3 f32 hidden-width temporaries + a couple of output-width f32 temporaries.
    per_row = (2 * 2 * n_input) + (2 * 4 * n_output) + 4 * (3 * n_hidden + 2 * n_output)
    budget = max(vmem_limit - 2 * resident - (4 << 20), 1 << 20)
    tb = min(max_batch_tile, budget // per_row)
    # Keep >= 2 grid steps so dimension_semantics=("parallel",) can shard the batch
    # over v7x's two TensorCores (harmless no-op on single-TC v5e/v6e).
    tb = min(tb, _round_up(pl.cdiv(B, 2), 16))
    if tb >= B:
        return int(B)  # one block covering the whole (small) batch: block dim == array dim
    return int(max(16, (tb // 16) * 16))  # bf16 sublane tiling: multiple of 16


_BUFFERED_WEIGHTS = None  # lazily probed: does this Pallas accept pipeline_mode=pl.Buffered(1)?


def _resident_spec(shape, single_buffer):
    # Grid-invariant block (index_map == (0, 0) for every step).  pl.Buffered(1)
    # single-buffers it, halving resident-weight VMEM for real layer sizes on v7x.
    if single_buffer:
        return pl.BlockSpec(shape, lambda i: (0, 0), pipeline_mode=pl.Buffered(1))
    return pl.BlockSpec(shape, lambda i: (0, 0))


def _run_pallas(x_bf16, w1, b1, w2, b2, tb, vmem_limit, single_buffer_weights):
    B, n_input = x_bf16.shape
    n_hidden = w1.shape[1]
    n_output = w2.shape[1]
    grid = (pl.cdiv(B, tb),)  # ragged tail handled by Pallas OOB masking (no repack)

    flops = 2 * B * (n_input * n_hidden + n_hidden * n_output)
    transcendentals = B * (n_hidden + n_output + 1)  # tanh + exp + rcp per row
    bytes_accessed = (2 * B * n_input                                   # x (bf16)
                      + 2 * (n_input * n_hidden + n_hidden * n_output)  # weights (bf16)
                      + 4 * (n_hidden + n_output)                       # biases (f32)
                      + 4 * B * n_output)                               # out (f32)

    return pl.pallas_call(
        _mlp_kernel,
        out_shape=jax.ShapeDtypeStruct((B, n_output), jnp.float32),
        grid=grid,
        in_specs=[
            pl.BlockSpec((tb, n_input), lambda i: (i, 0)),      # streamed batch tile
            _resident_spec(w1.shape, single_buffer_weights),    # VMEM-resident weights
            _resident_spec(b1.shape, single_buffer_weights),
            _resident_spec(w2.shape, single_buffer_weights),
            _resident_spec(b2.shape, single_buffer_weights),
        ],
        out_specs=pl.BlockSpec((tb, n_output), lambda i: (i, 0)),  # true n_output lanes only
        compiler_params=pltpu.CompilerParams(
            dimension_semantics=("parallel",),                  # batch sharded on v7x dual TC
            vmem_limit_bytes=vmem_limit,
        ),
        cost_estimate=pl.CostEstimate(
            flops=flops,
            transcendentals=transcendentals,
            bytes_accessed=bytes_accessed,
        ),
    )(x_bf16, w1, b1, w2, b2)


def my_second_model_forward(x, params, *, max_batch_tile=2048):
    """Forward pass of MySecondModel; `params` comes from prepare_params()."""
    global _BUFFERED_WEIGHTS
    w1, b1, w2, b2 = params
    B, n_input = x.shape
    n_hidden = w1.shape[1]
    n_output = w2.shape[1]

    # bf16 matmul operand for x (weights were cast once at init).  Under jit this cast
    # fuses with x's producer; eagerly it is a single small elementwise pass.
    x_bf16 = x if x.dtype == jnp.bfloat16 else x.astype(jnp.bfloat16)

    vmem_limit = _vmem_limit_bytes()
    tb = _pick_batch_tile(B, n_input, n_hidden, n_output, vmem_limit, max_batch_tile)

    if _BUFFERED_WEIGHTS is None:
        # One-time probe of pipeline_mode=pl.Buffered(1); fall back to default buffering.
        try:
            out = jax.block_until_ready(
                _run_pallas(x_bf16, w1, b1, w2, b2, tb, vmem_limit, True))
            _BUFFERED_WEIGHTS = True
            return out
        except Exception:
            _BUFFERED_WEIGHTS = False
    return _run_pallas(x_bf16, w1, b1, w2, b2, tb, vmem_limit, _BUFFERED_WEIGHTS)


# ---------------------------------------------------------------------------
# Params / reference / self-test
# ---------------------------------------------------------------------------
def init_params(key, n_input, n_hidden_unit, n_output):
    # PyTorch nn.Linear-style init: U(-1/sqrt(fan_in), 1/sqrt(fan_in)).
    k1, k2, k3, k4 = jax.random.split(key, 4)
    bound1 = 1.0 / (n_input ** 0.5)
    bound2 = 1.0 / (n_hidden_unit ** 0.5)
    w1 = jax.random.uniform(k1, (n_input, n_hidden_unit), jnp.float32, -bound1, bound1)
    b1 = jax.random.uniform(k2, (1, n_hidden_unit), jnp.float32, -bound1, bound1)
    w2 = jax.random.uniform(k3, (n_hidden_unit, n_output), jnp.float32, -bound2, bound2)
    b2 = jax.random.uniform(k4, (1, n_output), jnp.float32, -bound2, bound2)
    return w1, b1, w2, b2


def prepare_params(w1, b1, w2, b2):
    """One-time param prep (hoisted out of the forward): bf16 matmul weights, f32 biases."""
    return (w1.astype(jnp.bfloat16), b1.astype(jnp.float32),
            w2.astype(jnp.bfloat16), b2.astype(jnp.float32))


def reference_forward(x, w1, b1, w2, b2):
    h = jax.nn.sigmoid(x @ w1 + b1)
    return jax.nn.softmax(h @ w2 + b2, axis=1)


def _check(x, params_f32, params_prepared):
    out = jax.block_until_ready(my_second_model_forward(x, params_prepared))
    ref = reference_forward(x, *params_f32)
    assert out.shape == ref.shape
    # Tolerance vs. the full-f32 reference is bounded by bf16 operand quantization.
    assert jnp.allclose(out, ref, atol=2e-2, rtol=2e-2), \
        float(jnp.max(jnp.abs(out - ref)))
    # Exact softmax-denominator reciprocal -> rows sum to 1 within f32 rounding.
    assert jnp.allclose(jnp.sum(out, axis=1), jnp.ones((out.shape[0],)), atol=1e-5)
    return out


if __name__ == "__main__":
    # Small shapes consistent with the module; hidden=128 keeps MXU/lane alignment.
    B, n_input, n_hidden_unit, n_output = 8, 32, 128, 16

    key = jax.random.PRNGKey(0)
    kx, kp, kx2 = jax.random.split(key, 3)
    x = jax.random.normal(kx, (B, n_input), jnp.float32)
    params_f32 = init_params(kp, n_input, n_hidden_unit, n_output)
    params = prepare_params(*params_f32)  # bf16 weight casts hoisted out of the forward

    _check(x, params_f32, params)

    # Exercises the ragged-tail path (B not a multiple of the tile, no HBM repack)
    # and the >=2-grid-step "parallel" batch split for v7x's dual TensorCore.
    x2 = jax.random.normal(kx2, (300, n_input), jnp.float32)
    _check(x2, params_f32, params)

    print("KERNEL_OK")
</pallas_src>

<mosaic_0001>
module attributes {stable_mosaic.version = 11 : i64} {
  func.func @_mlp_kernel(%arg0: i32, %arg1: memref<8x32xbf16, #tpu.memory_space<vmem>>, %arg2: memref<32x128xbf16, #tpu.memory_space<vmem>>, %arg3: memref<1x128xf32, #tpu.memory_space<vmem>>, %arg4: memref<128x16xbf16, #tpu.memory_space<vmem>>, %arg5: memref<1x16xf32, #tpu.memory_space<vmem>>, %arg6: memref<8x16xf32, #tpu.memory_space<vmem>>) attributes {dimension_semantics = [#tpu.dimension_semantics<parallel>], iteration_bounds = array<i64: 1>, scalar_prefetch = 0 : i64, scratch_operands = 0 : i64, tpu.core_type = #tpu.core_type<tc>, window_params = [{transform_indices = @transform_0, window_bounds = array<i64: 8, 32>}, {pipeline_mode = #tpu.pipeline_mode<synchronous>, transform_indices = @transform_1, window_bounds = array<i64: 32, 128>}, {pipeline_mode = #tpu.pipeline_mode<synchronous>, transform_indices = @transform_2, window_bounds = array<i64: 1, 128>}, {pipeline_mode = #tpu.pipeline_mode<synchronous>, transform_indices = @transform_3, window_bounds = array<i64: 128, 16>}, {pipeline_mode = #tpu.pipeline_mode<synchronous>, transform_indices = @transform_4, window_bounds = array<i64: 1, 16>}, {transform_indices = @transform_5, window_bounds = array<i64: 8, 16>}]} {
    %c0 = arith.constant 0 : index
    %c0_0 = arith.constant 0 : index
    %0 = vector.load %arg1[%c0, %c0_0] : memref<8x32xbf16, #tpu.memory_space<vmem>>, vector<8x32xbf16>
    %c0_1 = arith.constant 0 : index
    %c0_2 = arith.constant 0 : index
    %1 = vector.load %arg2[%c0_1, %c0_2] : memref<32x128xbf16, #tpu.memory_space<vmem>>, vector<32x128xbf16>
    %cst = arith.constant dense<0.000000e+00> : vector<8x128xf32>
    %2 = tpu.matmul %0, %1, %cst {dimension_numbers = #tpu.dot_dimension_numbers<[1], [0], [0], [1], [0, 0, 1, 1], [], []>} : vector<8x32xbf16>, vector<32x128xbf16>, vector<8x128xf32> -> vector<8x128xf32>
    %c0_3 = arith.constant 0 : index
    %c0_4 = arith.constant 0 : index
    %3 = vector.load %arg3[%c0_3, %c0_4] : memref<1x128xf32, #tpu.memory_space<vmem>>, vector<1x128xf32>
    %4 = vector.broadcast %3 : vector<1x128xf32> to vector<8x128xf32>
    %5 = arith.addf %2, %4 : vector<8x128xf32>
    %cst_5 = arith.constant 5.000000e-01 : f32
    %6 = vector.broadcast %cst_5 : f32 to vector<8x128xf32>
    %7 = arith.mulf %6, %5 : vector<8x128xf32>
    %8 = math.tanh %7 : vector<8x128xf32>
    %cst_6 = arith.constant 5.000000e-01 : f32
    %9 = vector.broadcast %cst_6 : f32 to vector<8x128xf32>
    %10 = arith.mulf %9, %8 : vector<8x128xf32>
    %cst_7 = arith.constant 5.000000e-01 : f32
    %11 = vector.broadcast %cst_7 : f32 to vector<8x128xf32>
    %12 = arith.addf %10, %11 : vector<8x128xf32>
    %13 = arith.truncf %12 : vector<8x128xf32> to vector<8x128xbf16>
    %c0_8 = arith.constant 0 : index
    %c0_9 = arith.constant 0 : index
    %14 = vector.load %arg4[%c0_8, %c0_9] : memref<128x16xbf16, #tpu.memory_space<vmem>>, vector<128x16xbf16>
    %cst_10 = arith.constant dense<0.000000e+00> : vector<8x16xf32>
    %15 = tpu.matmul %13, %14, %cst_10 {dimension_numbers = #tpu.dot_dimension_numbers<[1], [0], [0], [1], [0, 0, 1, 1], [], []>} : vector<8x128xbf16>, vector<128x16xbf16>, vector<8x16xf32> -> vector<8x16xf32>
    %c0_11 = arith.constant 0 : index
    %c0_12 = arith.constant 0 : index
    %16 = vector.load %arg5[%c0_11, %c0_12] : memref<1x16xf32, #tpu.memory_space<vmem>>, vector<1x16xf32>
    %17 = vector.broadcast %16 : vector<1x16xf32> to vector<8x16xf32>
    %18 = arith.addf %15, %17 : vector<8x16xf32>
    %cst_13 = arith.constant dense<0xFF800000> : vector<8xf32>
    %19 = vector.multi_reduction <maximumf>, %18, %cst_13 [1] : vector<8x16xf32> to vector<8xf32>
    %20 = vector.shape_cast %19 : vector<8xf32> to vector<8x1xf32>
    %21 = vector.broadcast %20 : vector<8x1xf32> to vector<8x16xf32>
    %22 = arith.subf %18, %21 : vector<8x16xf32>
    %23 = math.exp %22 : vector<8x16xf32>
    %cst_14 = arith.constant dense<0.000000e+00> : vector<8xf32>
    %24 = vector.multi_reduction <add>, %23, %cst_14 [1] : vector<8x16xf32> to vector<8xf32>
    %25 = vector.shape_cast %24 : vector<8xf32> to vector<8x1xf32>
    %26 = tpu.reciprocal %25 : vector<8x1xf32> -> vector<8x1xf32>
    %27 = vector.broadcast %26 : vector<8x1xf32> to vector<8x16xf32>
    %28 = arith.mulf %23, %27 : vector<8x16xf32>
    %c0_15 = arith.constant 0 : index
    %c0_16 = arith.constant 0 : index
    %29 = vector.load %arg6[%c0_15, %c0_16] : memref<8x16xf32, #tpu.memory_space<vmem>>, vector<8x16xf32>
    tpu.vector_store %arg6[%c0_15, %c0_16], %28 {strides = array<i32>} : memref<8x16xf32, #tpu.memory_space<vmem>>, vector<8x16xf32>,
    return
  }
  func.func @transform_0(%arg0: i32) -> (i32, i32) {
    %c0_i32 = arith.constant 0 : i32
    %c0_i32_0 = arith.constant 0 : i32
    return %arg0, %c0_i32 : i32, i32
  }
  func.func @transform_1(%arg0: i32) -> (i32, i32) {
    %c0_i32 = arith.constant 0 : i32
    %c0_i32_0 = arith.constant 0 : i32
    %c0_i32_1 = arith.constant 0 : i32
    return %c0_i32, %c0_i32_0 : i32, i32
  }
  func.func @transform_2(%arg0: i32) -> (i32, i32) {
    %c0_i32 = arith.constant 0 : i32
    %c0_i32_0 = arith.constant 0 : i32
    %c0_i32_1 = arith.constant 0 : i32
    return %c0_i32, %c0_i32_0 : i32, i32
  }
  func.func @transform_3(%arg0: i32) -> (i32, i32) {
    %c0_i32 = arith.constant 0 : i32
    %c0_i32_0 = arith.constant 0 : i32
    %c0_i32_1 = arith.constant 0 : i32
    return %c0_i32, %c0_i32_0 : i32, i32
  }
  func.func @transform_4(%arg0: i32) -> (i32, i32) {
    %c0_i32 = arith.constant 0 : i32
    %c0_i32_0 = arith.constant 0 : i32
    %c0_i32_1 = arith.constant 0 : i32
    return %c0_i32, %c0_i32_0 : i32, i32
  }
  func.func @transform_5(%arg0: i32) -> (i32, i32) {
    %c0_i32 = arith.constant 0 : i32
    %c0_i32_0 = arith.constant 0 : i32
    return %arg0, %c0_i32 : i32, i32
  }
}

module attributes {stable_mosaic.version = 11 : i64} {
  func.func @_mlp_kernel(%arg0: i32, %arg1: memref<8x32xbf16, #tpu.memory_space<vmem>>, %arg2: memref<32x128xbf16, #tpu.memory_space<vmem>>, %arg3: memref<1x128xf32, #tpu.memory_space<vmem>>, %arg4: memref<128x16xbf16, #tpu.memory_space<vmem>>, %arg5: memref<1x16xf32, #tpu.memory_space<vmem>>, %arg6: memref<8x16xf32, #tpu.memory_space<vmem>>) attributes {dimension_semantics = [#tpu.dimension_semantics<parallel>], iteration_bounds = array<i64: 1>, scalar_prefetch = 0 : i64, scratch_operands = 0 : i64, tpu.core_type = #tpu.core_type<tc>, window_params = [{transform_indices = @transform_0, window_bounds = array<i64: 8, 32>}, {pipeline_mode = #tpu.pipeline_mode<synchronous>, transform_indices = @transform_1, window_bounds = array<i64: 32, 128>}, {pipeline_mode = #tpu.pipeline_mode<synchronous>, transform_indices = @transform_2, window_bounds = array<i64: 1, 128>}, {pipeline_mode = #tpu.pipeline_mode<synchronous>, transform_indices = @transform_3, window_bounds = array<i64: 128, 16>}, {pipeline_mode = #tpu.pipeline_mode<synchronous>, transform_indices = @transform_4, window_bounds = array<i64: 1, 16>}, {transform_indices = @transform_5, window_bounds = array<i64: 8, 16>}]} {
    %c0 = arith.constant 0 : index
    %c0_0 = arith.constant 0 : index
    %0 = vector.load %arg1[%c0, %c0_0] : memref<8x32xbf16, #tpu.memory_space<vmem>>, vector<8x32xbf16>
    %c0_1 = arith.constant 0 : index
    %c0_2 = arith.constant 0 : index
    %1 = vector.load %arg2[%c0_1, %c0_2] : memref<32x128xbf16, #tpu.memory_space<vmem>>, vector<32x128xbf16>
    %cst = arith.constant dense<0.000000e+00> : vector<8x128xf32>
    %2 = tpu.matmul %0, %1, %cst {dimension_numbers = #tpu.dot_dimension_numbers<[1], [0], [0], [1], [0, 0, 1, 1], [], []>} : vector<8x32xbf16>, vector<32x128xbf16>, vector<8x128xf32> -> vector<8x128xf32>
    %c0_3 = arith.constant 0 : index
    %c0_4 = arith.constant 0 : index
    %3 = vector.load %arg3[%c0_3, %c0_4] : memref<1x128xf32, #tpu.memory_space<vmem>>, vector<1x128xf32>
    %4 = vector.broadcast %3 : vector<1x128xf32> to vector<8x128xf32>
    %5 = arith.addf %2, %4 : vector<8x128xf32>
    %cst_5 = arith.constant 5.000000e-01 : f32
    %6 = vector.broadcast %cst_5 : f32 to vector<8x128xf32>
    %7 = arith.mulf %6, %5 : vector<8x128xf32>
    %8 = math.tanh %7 : vector<8x128xf32>
    %cst_6 = arith.constant 5.000000e-01 : f32
    %9 = vector.broadcast %cst_6 : f32 to vector<8x128xf32>
    %10 = arith.mulf %9, %8 : vector<8x128xf32>
    %cst_7 = arith.constant 5.000000e-01 : f32
    %11 = vector.broadcast %cst_7 : f32 to vector<8x128xf32>
    %12 = arith.addf %10, %11 : vector<8x128xf32>
    %13 = arith.truncf %12 : vector<8x128xf32> to vector<8x128xbf16>
    %c0_8 = arith.constant 0 : index
    %c0_9 = arith.constant 0 : index
    %14 = vector.load %arg4[%c0_8, %c0_9] : memref<128x16xbf16, #tpu.memory_space<vmem>>, vector<128x16xbf16>
    %cst_10 = arith.constant dense<0.000000e+00> : vector<8x16xf32>
    %15 = tpu.matmul %13, %14, %cst_10 {dimension_numbers = #tpu.dot_dimension_numbers<[1], [0], [0], [1], [0, 0, 1, 1], [], []>} : vector<8x128xbf16>, vector<128x16xbf16>, vector<8x16xf32> -> vector<8x16xf32>
    %c0_11 = arith.constant 0 : index
    %c0_12 = arith.constant 0 : index
    %16 = vector.load %arg5[%c0_11, %c0_12] : memref<1x16xf32, #tpu.memory_space<vmem>>, vector<1x16xf32>
    %17 = vector.broadcast %16 : vector<1x16xf32> to vector<8x16xf32>
    %18 = arith.addf %15, %17 : vector<8x16xf32>
    %cst_13 = arith.constant dense<0xFF800000> : vector<8xf32>
    %19 = vector.multi_reduction <maximumf>, %18, %cst_13 [1] : vector<8x16xf32> to vector<8xf32>
    %20 = vector.shape_cast %19 : vector<8xf32> to vector<8x1xf32>
    %21 = vector.broadcast %20 : vector<8x1xf32> to vector<8x16xf32>
    %22 = arith.subf %18, %21 : vector<8x16xf32>
    %23 = math.exp %22 : vector<8x16xf32>
    %cst_14 = arith.constant dense<0.000000e+00> : vector<8xf32>
    %24 = vector.multi_reduction <add>, %23, %cst_14 [1] : vector<8x16xf32> to vector<8xf32>
    %25 = vector.shape_cast %24 : vector<8xf32> to vector<8x1xf32>
    %26 = tpu.reciprocal %25 : vector<8x1xf32> -> vector<8x1xf32>
    %27 = vector.broadcast %26 : vector<8x1xf32> to vector<8x16xf32>
    %28 = arith.mulf %23, %27 : vector<8x16xf32>
    %c0_15 = arith.constant 0 : index
    %c0_16 = arith.constant 0 : index
    %29 = vector.load %arg6[%c0_15, %c0_16] : memref<8x16xf32, #tpu.memory_space<vmem>>, vector<8x16xf32>
    tpu.vector_store %arg6[%c0_15, %c0_16], %28 {strides = array<i32>} : memref<8x16xf32, #tpu.memory_space<vmem>>, vector<8x16xf32>,
    return
  }
  func.func @transform_0(%arg0: i32) -> (i32, i32) {
    %c0_i32 = arith.constant 0 : i32
    %c0_i32_0 = arith.constant 0 : i32
    return %arg0, %c0_i32 : i32, i32
  }
  func.func @transform_1(%arg0: i32) -> (i32, i32) {
    %c0_i32 = arith.constant 0 : i32
    %c0_i32_0 = arith.constant 0 : i32
    %c0_i32_1 = arith.constant 0 : i32
    return %c0_i32, %c0_i32_0 : i32, i32
  }
  func.func @transform_2(%arg0: i32) -> (i32, i32) {
    %c0_i32 = arith.constant 0 : i32
    %c0_i32_0 = arith.constant 0 : i32
    %c0_i32_1 = arith.constant 0 : i32
    return %c0_i32, %c0_i32_0 : i32, i32
  }
  func.func @transform_3(%arg0: i32) -> (i32, i32) {
    %c0_i32 = arith.constant 0 : i32
    %c0_i32_0 = arith.constant 0 : i32
    %c0_i32_1 = arith.constant 0 : i32
    return %c0_i32, %c0_i32_0 : i32, i32
  }
  func.func @transform_4(%arg0: i32) -> (i32, i32) {
    %c0_i32 = arith.constant 0 : i32
    %c0_i32_0 = arith.constant 0 : i32
    %c0_i32_1 = arith.constant 0 : i32
    return %c0_i32, %c0_i32_0 : i32, i32
  }
  func.func @transform_5(%arg0: i32) -> (i32, i32) {
    %c0_i32 = arith.constant 0 : i32
    %c0_i32_0 = arith.constant 0 : i32
    return %arg0, %c0_i32 : i32, i32
  }
}

</mosaic_0001>

<bundles_post_ra>
// kernel: tpu_custom_call.1
= control target key start
LH: loop header
LB: loop body
LE: loop exit
PB: predicated region body
PF: predicated region fallthrough
CT: control target
= control target key end

     0   :  { %s350_s0 = inlined_call_operand.vmem [shape: bf16[8,32], index: 0, kind: input, shape index: {}]   ;;  %s351_s1 = inlined_call_operand.vmem [shape: bf16[32,128], index: 1, kind: input, shape index: {}]   ;;  %s352_s2 = inlined_call_operand.vmem [shape: f32[1,128], index: 2, kind: input, shape index: {}]   ;;  %s353_s3 = inlined_call_operand.vmem [shape: bf16[128,16], index: 3, kind: input, shape index: {}]   ;;  %s354_s4 = inlined_call_operand.vmem [shape: f32[1,16], index: 4, kind: input, shape index: {}]   ;;  %s355_s5 = inlined_call_operand.hbm [shape: f32[8,16], index: 5, kind: output, shape index: {}]  }
   0x1   :  { %v230_v0 = vld [vmem:[%s351_s1 + $0x8] sm:$0xff]  ;;  %v238_v1 = vld [vmem:[%s353_s3 + $0x38] sm:$0xff]  ;;  %v229_v2 = vld [vmem:[%s351_s1] sm:$0xff] }
   0x2   :  { %53 = vmatpush.bf16.msra.mxu0 %v230_v0  ;;  %133 = vmatpush.bf16.msra.mxu1 %v238_v1  ;;  %v237_v3 = vld [vmem:[%s353_s3 + $0x30] sm:$0xff] }
   0x3   :  { %10 = vsyncpa [#allocation3], 0  ;;  %v22_v4 = vld [vmem:[%s350_s0] sm:$0xf]  ;;  %vm43_vm0 = vcmask 261120   ;;  %v236_v5 = vld [vmem:[%s353_s3 + $0x28] sm:$0xff] }
   0x4   :  { %v235_v6 = vld [vmem:[%s353_s3 + $0x20] sm:$0xff]  ;;  %v234_v7 = vld [vmem:[%s353_s3 + $0x18] sm:$0xff]  ;;  %v233_v8 = vld [vmem:[%s353_s3 + $0x10] sm:$0xff]  ;;  %vm146_vm1 = vcmask 130048   ;;  %s179_s18 = sshll.u32 %s355_s5, 4  ;;  %s180_s18 = int_to_ptr.hbm [resolvable:$true] %s179_s18 }
   0x5   :  { %v232_v9 = vld [vmem:[%s353_s3 + $0x8] sm:$0xff]  ;;  %v231_v10 = vld [vmem:[%s353_s3] sm:$0xff] }
   0x6   :  { %54 = vmatpush.bf16.msra.mxu0 %v229_v2  ;;  %134 = vmatpush.bf16.msra.mxu1 %v237_v3  ;;  %v240_v11 = vld [vmem:[%s352_s2] ss:$0 sm:$0xff]  ;;  %s274_s2 = smov [#allocation2]  }
   0x7   :  { %v241_v20 = vld [vmem:[%s354_s4] ss:$0 sm:$0xff]  ;;  %s177_s3 = sshll.u32 %s274_s2, 4  ;;  %s178_s3 = int_to_ptr.vmem [resolvable:$true] %s177_s3 }
   0x9   :  { %196 = vmatmul.msk.bf16.vlgmr.msra.gmra.mxu0 %vm43_vm0, %v22_v4 }
   0xa   :  { %135 = vmatpush.bf16.msra.mxu1 %v236_v5 }
   0xe   :  { %136 = vmatpush.bf16.msra.mxu1 %v235_v6 }
  0x12   :  { %137 = vmatpush.bf16.msra.mxu1 %v234_v7 }
  0x16   :  { %138 = vmatpush.bf16.msra.mxu1 %v233_v8 }
  0x1a   :  { %139 = vmatpush.bf16.msra.mxu1 %v232_v9 }
  0x1e   :  { %140 = vmatpush.bf16.msra.mxu1 %v231_v10 }
  0x86   :  { %v56_v12 = vpop.f32.mrf.mxu0 }
  0x87   :  { %v57_v13 = vadd.f32 %v240_v11, %v56_v12 }
  0x89   :  { %v60_v14 = vmul.f32 0.5, %v57_v13 }
  0x8b   :  { %242 = vtanh.f32 %v60_v14 }
  0x8e   :  { %v58_v15 = vpop.f32.mrf.mxu0 }
  0x91   :  { %v243_v16 = vpop.eup %242 }
  0x92   :  { %v62_v17 = vmul.f32 0.5, %v243_v16 }
  0x94   :  { %v63_v18 = vadd.f32 0.5, %v62_v17 }
  0x96   :  { %v64_v19 = vpack.c.bf16 %v63_v18, %v63_v18 }
  0x98   :  { %141 = vmatmul.bf16.vlgmr.msra.gmra.mxu1 %v64_v19 }
 0x115   :  { %v142_v21 = vpop.f32.mrf.mxu1 }
 0x116   :  { %v143_v22 = vadd.f32 %v241_v20, %v142_v21 }
 0x118   :  { %v147_v23 = vsel %vm146_vm1, %v143_v22, -inf }
 0x119   :  { %148 = vmax.xlane.f32.xlu0 %v147_v23 }
 0x11d   :  { %v144_v24 = vpop.f32.mrf.mxu1 }
 0x18c   :  { %v149_v25 = vpop.xlane.xlu0 %148 }
 0x18d   :  { %v150_v26 = vsub.f32 %v143_v22, %v149_v25 }
 0x18f   :  { %v151_v27 = vmul.f32 1.442695, %v150_v26 }
 0x191   :  { %244 = vpow2.f32 %v151_v27 }
 0x197   :  { %v245_v28 = vpop.eup %244 }
 0x198   :  { %v153_v29 = vsel %vm146_vm1, %v245_v28, 0.0 }
 0x199   :  { %154 = vadd.xlane.f32.xlu0 %v153_v29 }
 0x20c   :  { %v155_v30 = vpop.xlane.xlu0 %154 }
 0x20d   :  { %246 = vrcp.f32 %v155_v30  ;;  %v167_v34 = vand.u32 2147483648, %v155_v30  ;;  %v165_v36 = vand.u32 2147483647, %v155_v30  ;;  %vm161_vm3 = vweird.f32 %v155_v30 }
 0x20f   :  { %v168_v38 = vor.u32 1.1754944e-38, %v167_v34  ;;  %vm166_vm5 = vcmp.eq.f32.partialorder %v165_v36, 8.507059e+37 }
 0x213   :  { %v247_v31 = vpop.eup %246 }
 0x214   :  { %v157_v32 = vmul.f32 %v247_v31, %v155_v30  ;;  %vm162_vm2 = vweird.f32 %v247_v31 }
 0x215   :  { %vm163_vm4 = vmor %vm161_vm3, %vm162_vm2 }
 0x216   :  { %v158_v33 = vsub.f32 1.0, %v157_v32 }
 0x218   :  { %v159_v35 = vmul.f32 %v247_v31, %v158_v33 }
 0x21a   :  { %v160_v37 = vadd.f32 %v247_v31, %v159_v35 }
 0x21c   :  { %v164_v39 = vsel %vm163_vm4, %v247_v31, %v160_v37 }
 0x21d   :  { %v169_v40 = vsel %vm166_vm5, %v168_v38, %v164_v39 }
 0x21e   :  { %v170_v41 = vmul.f32 %v245_v28, %v169_v40 }
 0x220   :  { %171 = vst.msk [vmem:[#allocation2] sm:$0xff] %vm146_vm1, %v170_v41 }
 0x221   :  { %182 = dma.vmem_to_hbm [thread:$0]  %s178_s3, 128, %s180_s18, [#allocation3]  }
 0x222   :  { %272 = dma.done.wait [#allocation3], 128  }
 0x223   :  { %273 = vsyncadd [#allocation3], 4294967168 }
 0x224   :  { %187 = vsyncpa [#allocation3], 1 }

// kernel: tpu_custom_call.1
= control target key start
LH: loop header
LB: loop body
LE: loop exit
PB: predicated region body
PF: predicated region fallthrough
CT: control target
= control target key end

     0   :  { %s350_s0 = inlined_call_operand.vmem [shape: bf16[8,32], index: 0, kind: input, shape index: {}]   ;;  %s351_s1 = inlined_call_operand.vmem [shape: bf16[32,128], index: 1, kind: input, shape index: {}]   ;;  %s352_s2 = inlined_call_operand.vmem [shape: f32[1,128], index: 2, kind: input, shape index: {}]   ;;  %s353_s3 = inlined_call_operand.vmem [shape: bf16[128,16], index: 3, kind: input, shape index: {}]   ;;  %s354_s4 = inlined_call_operand.vmem [shape: f32[1,16], index: 4, kind: input, shape index: {}]   ;;  %s355_s5 = inlined_call_operand.hbm [shape: f32[8,16], index: 5, kind: output, shape index: {}]  }
   0x1   :  { %v230_v0 = vld [vmem:[%s351_s1 + $0x8] sm:$0xff]  ;;  %v238_v1 = vld [vmem:[%s353_s3 + $0x38] sm:$0xff]  ;;  %v229_v2 = vld [vmem:[%s351_s1] sm:$0xff] }
   0x2   :  { %53 = vmatpush.bf16.msra.mxu0 %v230_v0  ;;  %133 = vmatpush.bf16.msra.mxu1 %v238_v1  ;;  %v237_v3 = vld [vmem:[%s353_s3 + $0x30] sm:$0xff] }
   0x3   :  { %10 = vsyncpa [#allocation3], 0  ;;  %v22_v4 = vld [vmem:[%s350_s0] sm:$0xf]  ;;  %vm43_vm0 = vcmask 261120   ;;  %v236_v5 = vld [vmem:[%s353_s3 + $0x28] sm:$0xff] }
   0x4   :  { %v235_v6 = vld [vmem:[%s353_s3 + $0x20] sm:$0xff]  ;;  %v234_v7 = vld [vmem:[%s353_s3 + $0x18] sm:$0xff]  ;;  %v233_v8 = vld [vmem:[%s353_s3 + $0x10] sm:$0xff]  ;;  %vm146_vm1 = vcmask 130048   ;;  %s179_s18 = sshll.u32 %s355_s5, 4  ;;  %s180_s18 = int_to_ptr.hbm [resolvable:$true] %s179_s18 }
   0x5   :  { %v232_v9 = vld [vmem:[%s353_s3 + $0x8] sm:$0xff]  ;;  %v231_v10 = vld [vmem:[%s353_s3] sm:$0xff] }
   0x6   :  { %54 = vmatpush.bf16.msra.mxu0 %v229_v2  ;;  %134 = vmatpush.bf16.msra.mxu1 %v237_v3  ;;  %v240_v11 = vld [vmem:[%s352_s2] ss:$0 sm:$0xff]  ;;  %s274_s2 = smov [#allocation2]  }
   0x7   :  { %v241_v20 = vld [vmem:[%s354_s4] ss:$0 sm:$0xff]  ;;  %s177_s3 = sshll.u32 %s274_s2, 4  ;;  %s178_s3 = int_to_ptr.vmem [resolvable:$true] %s177_s3 }
   0x9   :  { %196 = vmatmul.msk.bf16.vlgmr.msra.gmra.mxu0 %vm43_vm0, %v22_v4 }
   0xa   :  { %135 = vmatpush.bf16.msra.mxu1 %v236_v5 }
   0xe   :  { %136 = vmatpush.bf16.msra.mxu1 %v235_v6 }
  0x12   :  { %137 = vmatpush.bf16.msra.mxu1 %v234_v7 }
  0x16   :  { %138 = vmatpush.bf16.msra.mxu1 %v233_v8 }
  0x1a   :  { %139 = vmatpush.bf16.msra.mxu1 %v232_v9 }
  0x1e   :  { %140 = vmatpush.bf16.msra.mxu1 %v231_v10 }
  0x86   :  { %v56_v12 = vpop.f32.mrf.mxu0 }
  0x87   :  { %v57_v13 = vadd.f32 %v240_v11, %v56_v12 }
  0x89   :  { %v60_v14 = vmul.f32 0.5, %v57_v13 }
  0x8b   :  { %242 = vtanh.f32 %v60_v14 }
  0x8e   :  { %v58_v15 = vpop.f32.mrf.mxu0 }
  0x91   :  { %v243_v16 = vpop.eup %242 }
  0x92   :  { %v62_v17 = vmul.f32 0.5, %v243_v16 }
  0x94   :  { %v63_v18 = vadd.f32 0.5, %v62_v17 }
  0x96   :  { %v64_v19 = vpack.c.bf16 %v63_v18, %v63_v18 }
  0x98   :  { %141 = vmatmul.bf16.vlgmr.msra.gmra.mxu1 %v64_v19 }
 0x115   :  { %v142_v21 = vpop.f32.mrf.mxu1 }
 0x116   :  { %v143_v22 = vadd.f32 %v241_v20, %v142_v21 }
 0x118   :  { %v147_v23 = vsel %vm146_vm1, %v143_v22, -inf }
 0x119   :  { %148 = vmax.xlane.f32.xlu0 %v147_v23 }
 0x11d   :  { %v144_v24 = vpop.f32.mrf.mxu1 }
 0x18c   :  { %v149_v25 = vpop.xlane.xlu0 %148 }
 0x18d   :  { %v150_v26 = vsub.f32 %v143_v22, %v149_v25 }
 0x18f   :  { %v151_v27 = vmul.f32 1.442695, %v150_v26 }
 0x191   :  { %244 = vpow2.f32 %v151_v27 }
 0x197   :  { %v245_v28 = vpop.eup %244 }
 0x198   :  { %v153_v29 = vsel %vm146_vm1, %v245_v28, 0.0 }
 0x199   :  { %154 = vadd.xlane.f32.xlu0 %v153_v29 }
 0x20c   :  { %v155_v30 = vpop.xlane.xlu0 %154 }
 0x20d   :  { %246 = vrcp.f32 %v155_v30  ;;  %v167_v34 = vand.u32 2147483648, %v155_v30  ;;  %v165_v36 = vand.u32 2147483647, %v155_v30  ;;  %vm161_vm3 = vweird.f32 %v155_v30 }
 0x20f   :  { %v168_v38 = vor.u32 1.1754944e-38, %v167_v34  ;;  %vm166_vm5 = vcmp.eq.f32.partialorder %v165_v36, 8.507059e+37 }
 0x213   :  { %v247_v31 = vpop.eup %246 }
 0x214   :  { %v157_v32 = vmul.f32 %v247_v31, %v155_v30  ;;  %vm162_vm2 = vweird.f32 %v247_v31 }
 0x215   :  { %vm163_vm4 = vmor %vm161_vm3, %vm162_vm2 }
 0x216   :  { %v158_v33 = vsub.f32 1.0, %v157_v32 }
 0x218   :  { %v159_v35 = vmul.f32 %v247_v31, %v158_v33 }
 0x21a   :  { %v160_v37 = vadd.f32 %v247_v31, %v159_v35 }
 0x21c   :  { %v164_v39 = vsel %vm163_vm4, %v247_v31, %v160_v37 }
 0x21d   :  { %v169_v40 = vsel %vm166_vm5, %v168_v38, %v164_v39 }
 0x21e   :  { %v170_v41 = vmul.f32 %v245_v28, %v169_v40 }
 0x220   :  { %171 = vst.msk [vmem:[#allocation2] sm:$0xff] %vm146_vm1, %v170_v41 }
 0x221   :  { %182 = dma.vmem_to_hbm [thread:$0]  %s178_s3, 128, %s180_s18, [#allocation3]  }
 0x222   :  { %272 = dma.done.wait [#allocation3], 128  }
 0x223   :  { %273 = vsyncadd [#allocation3], 4294967168 }
 0x224   :  { %187 = vsyncpa [#allocation3], 1 }

</bundles_post_ra>
